<compile_context>
chip_gen: v7x
topology: tpu7x:2x2x1
jax: 0.10.0
libtpu: 0.0.40
codegen_flags: <defaults>
</compile_context>

<pallas_src>
import itertools

import numpy as np
import jax
import jax.numpy as jnp
from jax.experimental import pallas as pl
from jax.experimental.pallas import tpu as pltpu


def _round_up(x, m):
    return (x + m - 1) // m * m


def _dct8x8_kernel(x_ref, t_ref, b_ref, o_ref):
    # x_ref: (TILE_M, LANES)  packed flattened 8x8 pixel blocks
    # t_ref: (LANES, LANES)   block-diagonal flattened, scale-folded DCT basis
    # b_ref: (1, LANES)       folded "-128" offset bias per coefficient
    # o_ref: (TILE_M, LANES)  packed flattened DCT coefficients
    y = jnp.dot(x_ref[...], t_ref[...], preferred_element_type=jnp.float32)
    o_ref[...] = y + b_ref[...]


def dct_8x8(image, tensor, scale, *, pack=2, tile_m=2048):
    """image: (B, 8, 8) f32, tensor: (8,8,8,8) f32, scale: (8,8) f32 -> (B, 8, 8)."""
    B = image.shape[0]
    assert image.shape[1:] == (8, 8)
    lanes = 64 * pack

    # Flatten each 8x8 block to 64 contiguous values (pure reshape, no copy).
    x = image.reshape(B, 64).astype(jnp.float32)

    # Pack `pack` blocks per lane-row and pad rows to a tile multiple.
    rows = pl.cdiv(B, pack)                      # packed rows needed
    tm = min(tile_m, _round_up(rows, 8))         # shrink tile for tiny batches
    rows_p = _round_up(rows, tm)                 # padded packed rows
    b_pad = rows_p * pack
    if b_pad != B:
        x = jnp.pad(x, ((0, b_pad - B), (0, 0)))  # only copy that isn't a pure reshape
    xp = x.reshape(rows_p, lanes)                # contiguous: pack adjacent blocks

    # Constants: flattened 64x64 DCT basis with the per-coefficient scale
    # folded in, replicated block-diagonally so one lane-dense matmul handles
    # all packed blocks; the "-128" offset folds into a bias row vector.
    t64 = tensor.reshape(64, 64).astype(jnp.float32)
    s64 = scale.reshape(1, 64).astype(jnp.float32)
    t_s = t64 * s64                                               # (64, 64)
    t_blk = jnp.kron(jnp.eye(pack, dtype=jnp.float32), t_s)      # (lanes, lanes)
    bias = -128.0 * jnp.sum(t_s, axis=0, keepdims=True)          # (1, 64)
    bias_blk = jnp.tile(bias, (1, pack))                          # (1, lanes)

    grid = (rows_p // tm,)

    out = pl.pallas_call(
        _dct8x8_kernel,
        out_shape=jax.ShapeDtypeStruct((rows_p, lanes), jnp.float32),
        grid_spec=pltpu.PrefetchScalarGridSpec(
            num_scalar_prefetch=0,
            grid=grid,
            in_specs=[
                pl.BlockSpec((tm, lanes), lambda i: (i, 0)),
                pl.BlockSpec((lanes, lanes), lambda i: (0, 0)),
                pl.BlockSpec((1, lanes), lambda i: (0, 0)),
            ],
            out_specs=pl.BlockSpec((tm, lanes), lambda i: (i, 0)),
        ),
        compiler_params=pltpu.CompilerParams(
            dimension_semantics=("parallel",)),
    )(xp, t_blk, bias_blk)

    # Unpack: (rows_p, lanes) -> (b_pad, 64) -> drop padding -> (B, 8, 8).
    return out.reshape(b_pad, 64)[:B].reshape(B, 8, 8)


def make_params():
    # Deterministic parameter init, exactly as in the module's __init__.
    tensor = np.zeros((8, 8, 8, 8), dtype=np.float32)
    for xx, yy, uu, vv in itertools.product(range(8), repeat=4):
        tensor[xx, yy, uu, vv] = (np.cos((2 * xx + 1) * uu * np.pi / 16)
                                  * np.cos((2 * yy + 1) * vv * np.pi / 16))
    alpha = np.array([1.0 / np.sqrt(2)] + [1] * 7)
    scale = (np.outer(alpha, alpha) * 0.25).astype(np.float32)
    return jnp.asarray(tensor), jnp.asarray(scale)


if __name__ == "__main__":
    key = jax.random.PRNGKey(0)
    B = 37  # small, deliberately not tile/pack aligned to exercise padding
    image = jax.random.uniform(key, (B, 8, 8), dtype=jnp.float32) * 255.0

    tensor, scale = make_params()

    result = dct_8x8(image, tensor, scale)
    result = jax.block_until_ready(result)
    assert result.shape == (B, 8, 8)

    # Exact elementwise f32 reference (no MXU), matching the PyTorch forward.
    ref = scale[None, :, :] * jnp.sum(
        (image - 128.0)[:, :, :, None, None] * tensor[None], axis=(1, 2))
    # Generous tolerance to be robust to MXU accumulation-order differences.
    assert jnp.allclose(result, ref, rtol=1e-2, atol=1.0), float(
        jnp.max(jnp.abs(result - ref)))

    print("KERNEL_OK")
</pallas_src>

<mosaic_0001>
module attributes {stable_mosaic.version = 11 : i64} {
  func.func @_dct8x8_kernel(%arg0: i32, %arg1: memref<24x128xf32, #tpu.memory_space<vmem>>, %arg2: memref<128x128xf32, #tpu.memory_space<vmem>>, %arg3: memref<1x128xf32, #tpu.memory_space<vmem>>, %arg4: memref<24x128xf32, #tpu.memory_space<vmem>>) attributes {dimension_semantics = [#tpu.dimension_semantics<parallel>], iteration_bounds = array<i64: 1>, scalar_prefetch = 0 : i64, scratch_operands = 0 : i64, tpu.core_type = #tpu.core_type<tc>, window_params = [{transform_indices = @transform_0, window_bounds = array<i64: 24, 128>}, {pipeline_mode = #tpu.pipeline_mode<synchronous>, transform_indices = @transform_1, window_bounds = array<i64: 128, 128>}, {pipeline_mode = #tpu.pipeline_mode<synchronous>, transform_indices = @transform_2, window_bounds = array<i64: 1, 128>}, {transform_indices = @transform_3, window_bounds = array<i64: 24, 128>}]} {
    %c0 = arith.constant 0 : index
    %c0_0 = arith.constant 0 : index
    %0 = vector.load %arg1[%c0, %c0_0] : memref<24x128xf32, #tpu.memory_space<vmem>>, vector<24x128xf32>
    %c0_1 = arith.constant 0 : index
    %c0_2 = arith.constant 0 : index
    %1 = vector.load %arg2[%c0_1, %c0_2] : memref<128x128xf32, #tpu.memory_space<vmem>>, vector<128x128xf32>
    %cst = arith.constant dense<0.000000e+00> : vector<24x128xf32>
    %2 = tpu.matmul %0, %1, %cst {dimension_numbers = #tpu.dot_dimension_numbers<[1], [0], [0], [1], [0, 0, 1, 1], [], []>} : vector<24x128xf32>, vector<128x128xf32>, vector<24x128xf32> -> vector<24x128xf32>
    %c0_3 = arith.constant 0 : index
    %c0_4 = arith.constant 0 : index
    %3 = vector.load %arg3[%c0_3, %c0_4] : memref<1x128xf32, #tpu.memory_space<vmem>>, vector<1x128xf32>
    %4 = vector.broadcast %3 : vector<1x128xf32> to vector<24x128xf32>
    %5 = arith.addf %2, %4 : vector<24x128xf32>
    %c0_5 = arith.constant 0 : index
    %c0_6 = arith.constant 0 : index
    %6 = vector.load %arg4[%c0_5, %c0_6] : memref<24x128xf32, #tpu.memory_space<vmem>>, vector<24x128xf32>
    tpu.vector_store %arg4[%c0_5, %c0_6], %5 {strides = array<i32>} : memref<24x128xf32, #tpu.memory_space<vmem>>, vector<24x128xf32>,
    return
  }
  func.func @transform_0(%arg0: i32) -> (i32, i32) {
    %c0_i32 = arith.constant 0 : i32
    %c0_i32_0 = arith.constant 0 : i32
    return %arg0, %c0_i32 : i32, i32
  }
  func.func @transform_1(%arg0: i32) -> (i32, i32) {
    %c0_i32 = arith.constant 0 : i32
    %c0_i32_0 = arith.constant 0 : i32
    %c0_i32_1 = arith.constant 0 : i32
    return %c0_i32, %c0_i32_0 : i32, i32
  }
  func.func @transform_2(%arg0: i32) -> (i32, i32) {
    %c0_i32 = arith.constant 0 : i32
    %c0_i32_0 = arith.constant 0 : i32
    %c0_i32_1 = arith.constant 0 : i32
    return %c0_i32, %c0_i32_0 : i32, i32
  }
  func.func @transform_3(%arg0: i32) -> (i32, i32) {
    %c0_i32 = arith.constant 0 : i32
    %c0_i32_0 = arith.constant 0 : i32
    return %arg0, %c0_i32 : i32, i32
  }
}

</mosaic_0001>

<bundles_post_ra>
// kernel: tpu_custom_call.1
= control target key start
LH: loop header
LB: loop body
LE: loop exit
PB: predicated region body
PF: predicated region fallthrough
CT: control target
= control target key end

     0   :  { %8 = vsyncpa [#allocation3], 0  ;;  %s430_s0 = inlined_call_operand.hbm [shape: f32[24,128], index: 0, kind: input, shape index: {}]   ;;  %s431_s1 = inlined_call_operand.hbm [shape: f32[128,128], index: 1, kind: input, shape index: {}]   ;;  %s432_s2 = inlined_call_operand.vmem [shape: f32[1,128], index: 2, kind: input, shape index: {}]   ;;  %s433_s3 = inlined_call_operand.hbm [shape: f32[24,128], index: 3, kind: output, shape index: {}]  }
   0x1   :  { %9 = vsyncpa [#allocation6], 0 }
   0x2   :  { %10 = vsyncpa [#allocation4], 0  ;;  %s351_s12 = smov [#allocation2]   ;;  %s279_s16 = scalar_lea.hbm %s430_s0, 384 }
   0x3   :  { %s16_s13 = sshll.u32 %s351_s12, 4  ;;  %p280_p0 = scmp.ne.s32.totalorder %s430_s0, %s279_s16  ;;  %s17_s13 = int_to_ptr.vmem [resolvable:$true] %s16_s13 }
   0x4   :  { %p283_p1 = scmp.lt.u32.totalorder %s279_s16, %s430_s0 }
   0x6   :  { %p285_p2 = pnand %p283_p1, %p280_p0 }
   0x8   :  { %288 = shalt.err (!%p285_p2)
}
   0x9   :  { %s289_s21 = scalar_lea.vmem %s17_s13, 384  ;;  %p294_p4 = scmp.lt.s32.totalorder %s17_s13, %s17_s13 }
   0xa   :  { %p290_p3 = scmp.ne.s32.totalorder %s17_s13, %s289_s21  ;;  %p295_p5 = scmp.lt.s32.totalorder %s289_s21, %s289_s21 }
   0xc   :  { %p296_p6 = por %p295_p5, %p294_p4 }
   0xe   :  { %p297_p7 = pnand %p296_p6, %p290_p3 }
  0x10   :  { %300 = shalt.err (!%p297_p7)
}
  0x11   :  { %s352_s22 = smov 128   ;;  %s353_s23 = smov 8  }
  0x12   :  { %22 = dma.hbm_to_vmem [thread:$0]  %s430_s0, 384, %s17_s13, [#allocation3], %s352_s22, %s352_s22, %s353_s23  }
  0x13   :  { %s354_s26 = smov [#allocation5]   ;;  %s301_s30 = scalar_lea.hbm %s431_s1, 2048 }
  0x14   :  { %s28_s27 = sshll.u32 %s354_s26, 4  ;;  %p302_p8 = scmp.ne.s32.totalorder %s431_s1, %s301_s30  ;;  %s29_s27 = int_to_ptr.vmem [resolvable:$true] %s28_s27 }
  0x15   :  { %p305_p9 = scmp.lt.u32.totalorder %s301_s30, %s431_s1 }
  0x17   :  { %p307_p10 = pnand %p305_p9, %p302_p8 }
  0x19   :  { %310 = shalt.err (!%p307_p10)
}
  0x1a   :  { %s311_s8 = scalar_lea.vmem %s29_s27, 2048  ;;  %p316_p12 = scmp.lt.s32.totalorder %s29_s27, %s29_s27 }
  0x1b   :  { %p312_p11 = scmp.ne.s32.totalorder %s29_s27, %s311_s8  ;;  %p317_p13 = scmp.lt.s32.totalorder %s311_s8, %s311_s8 }
  0x1d   :  { %p318_p0 = por %p317_p13, %p316_p12 }
  0x1f   :  { %p319_p1 = pnand %p318_p0, %p312_p11 }
  0x21   :  { %322 = shalt.err (!%p319_p1)
}
  0x22   :  { %34 = dma.hbm_to_vmem [thread:$0]  %s431_s1, 2048, %s29_s27, [#allocation6], %s352_s22, %s352_s22, %s353_s23  }
  0x23   :  { %345 = dma.done.wait [#allocation3], 384  }
  0x24   :  { %346 = vsyncadd [#allocation3], 4294966912 }
  0x25   :  { %347 = dma.done.wait [#allocation6], 2048  }
  0x26   :  { %348 = vsyncadd [#allocation6], 4294965248  ;;  %v355_v0 = vmov 0.0|0.0   ;;  %vm356_vm0 = vmmov 0   ;;  %v357_v1 = vmov 0.0   ;;  %v46_v2 = vld [vmem:[#allocation5] sm:$0xff] }
  0x27   :  { %255 = vmatprep.subr.bf16.mxu1 %v355_v0  ;;  %231 = vmatprep.subr.bf16.mxu0 %v355_v0  ;;  %v47_v3 = vld [vmem:[#allocation5 + $0x8] sm:$0xff]  ;;  %v48_v4 = vld [vmem:[#allocation5 + $0x10] sm:$0xff]  ;;  %v49_v6 = vld [vmem:[#allocation5 + $0x18] sm:$0xff]  ;;  %s358_s11 = smov [#allocation7]  }
  0x28   :  { %225 = vmatprep.mubr.msk.f32.mxu1 %vm356_vm0, %v357_v1  ;;  %222 = vmatprep.mubr.msk.f32.mxu0 %vm356_vm0, %v357_v1  ;;  %v232_v5 = vpack.c.bf16 %v47_v3, %v46_v2  ;;  %v235_v7 = vpack.c.bf16 %v49_v6, %v48_v4  ;;  %v50_v8 = vld [vmem:[#allocation5 + $0x20] sm:$0xff]  ;;  %v51_v9 = vld [vmem:[#allocation5 + $0x28] sm:$0xff]  ;;  %v52_v11 = vld [vmem:[#allocation5 + $0x30] sm:$0xff]  ;;  %s157_s12 = sshll.u32 %s358_s11, 4  ;;  %s158_s12 = int_to_ptr.vmem [resolvable:$true] %s157_s12 }
  0x29   :  { %v238_v10 = vpack.c.bf16 %v51_v9, %v50_v8  ;;  %v53_v12 = vld [vmem:[#allocation5 + $0x38] sm:$0xff]  ;;  %v54_v14 = vld [vmem:[#allocation5 + $0x40] sm:$0xff]  ;;  %v55_v15 = vld [vmem:[#allocation5 + $0x48] sm:$0xff]  ;;  %s323_s13 = scalar_lea.vmem %s158_s12, 384  ;;  %p328_p3 = scmp.lt.s32.totalorder %s158_s12, %s158_s12 }
  0x2a   :  { %263 = vmatpush3.bf16.msra.mxu1 %v232_v5  ;;  %233 = vmatpush3.bf16.msra.mxu0 %v232_v5  ;;  %v241_v13 = vpack.c.bf16 %v53_v12, %v52_v11  ;;  %v244_v16 = vpack.c.bf16 %v55_v15, %v54_v14  ;;  %v56_v17 = vld [vmem:[#allocation5 + $0x50] sm:$0xff]  ;;  %v57_v18 = vld [vmem:[#allocation5 + $0x58] sm:$0xff]  ;;  %v58_v20 = vld [vmem:[#allocation5 + $0x60] sm:$0xff]  ;;  %p324_p2 = scmp.ne.s32.totalorder %s158_s12, %s323_s13  ;;  %p329_p4 = scmp.lt.s32.totalorder %s323_s13, %s323_s13 }
  0x2b   :  { %256 = vmatprep.subr.bf16.mxu1 %v355_v0  ;;  %234 = vmatprep.subr.bf16.mxu0 %v355_v0  ;;  %v247_v19 = vpack.c.bf16 %v57_v18, %v56_v17  ;;  %v59_v21 = vld [vmem:[#allocation5 + $0x68] sm:$0xff]  ;;  %v60_v23 = vld [vmem:[#allocation5 + $0x70] sm:$0xff]  ;;  %v61_v24 = vld [vmem:[#allocation5 + $0x78] sm:$0xff] }
  0x2c   :  { %v250_v22 = vpack.c.bf16 %v59_v21, %v58_v20  ;;  %v253_v25 = vpack.c.bf16 %v61_v24, %v60_v23  ;;  %v44_v26 = vld [vmem:[#allocation2 + $0x8] sm:$0xff]  ;;  %v43_v27 = vld [vmem:[#allocation2] sm:$0xff]  ;;  %v45_v28 = vld [vmem:[#allocation2 + $0x10] sm:$0xff]  ;;  %p330_p5 = por %p329_p4, %p328_p3 }
  0x2d   :  { %v170_v29 = vld [vmem:[%s432_s2] ss:$0 sm:$0xff] }
  0x2e   :  { %264 = vmatpush3.bf16.msra.mxu1 %v235_v7  ;;  %236 = vmatpush3.bf16.msra.mxu0 %v235_v7  ;;  %p331_p6 = pnand %p330_p5, %p324_p2 }
  0x2f   :  { %257 = vmatprep.subr.bf16.mxu1 %v355_v0  ;;  %237 = vmatprep.subr.bf16.mxu0 %v355_v0 }
  0x32   :  { %265 = vmatpush3.bf16.msra.mxu1 %v238_v10  ;;  %239 = vmatpush3.bf16.msra.mxu0 %v238_v10 }
  0x33   :  { %258 = vmatprep.subr.bf16.mxu1 %v355_v0  ;;  %240 = vmatprep.subr.bf16.mxu0 %v355_v0 }
  0x36   :  { %266 = vmatpush3.bf16.msra.mxu1 %v241_v13  ;;  %242 = vmatpush3.bf16.msra.mxu0 %v241_v13 }
  0x37   :  { %259 = vmatprep.subr.bf16.mxu1 %v355_v0  ;;  %243 = vmatprep.subr.bf16.mxu0 %v355_v0 }
  0x3a   :  { %267 = vmatpush3.bf16.msra.mxu1 %v244_v16  ;;  %245 = vmatpush3.bf16.msra.mxu0 %v244_v16 }
  0x3b   :  { %260 = vmatprep.subr.bf16.mxu1 %v355_v0  ;;  %246 = vmatprep.subr.bf16.mxu0 %v355_v0 }
  0x3e   :  { %268 = vmatpush3.bf16.msra.mxu1 %v247_v19  ;;  %248 = vmatpush3.bf16.msra.mxu0 %v247_v19 }
  0x3f   :  { %261 = vmatprep.subr.bf16.mxu1 %v355_v0  ;;  %249 = vmatprep.subr.bf16.mxu0 %v355_v0 }
  0x42   :  { %269 = vmatpush3.bf16.msra.mxu1 %v250_v22  ;;  %251 = vmatpush3.bf16.msra.mxu0 %v250_v22 }
  0x43   :  { %262 = vmatprep.subr.bf16.mxu1 %v355_v0  ;;  %252 = vmatprep.subr.bf16.mxu0 %v355_v0 }
  0x46   :  { %270 = vmatpush3.bf16.msra.mxu1 %v253_v25  ;;  %254 = vmatpush3.bf16.msra.mxu0 %v253_v25 }
  0x49   :  { %226 = vmatmul.mubr.f32.vlgmr.msra.gmra.mrb[0].mxu1 %v44_v26  ;;  %223 = vmatmul.mubr.f32.vlgmr.msra.gmra.mrb[0].mxu0 %v43_v27 }
  0x4a   :  { %228 = vmatprep.mubr.msk.f32.mxu1 %vm356_vm0, %v357_v1 }
  0x4d   :  { %229 = vmatmul.mubr.f32.gmra.mrb[2].mxu1 %v45_v28 }
 0x11c   :  { %v140_v30 = vpop.f32.mrb[0].mxu1  ;;  %v135_v31 = vpop.f32.mrb[0].mxu0 }
 0x11d   :  { %v141_v32 = vadd.f32 %v170_v29, %v140_v30  ;;  %v227_v33 = vpop.f32.mrb[1].mxu1  ;;  %v136_v34 = vadd.f32 %v170_v29, %v135_v31  ;;  %v224_v35 = vpop.f32.mrb[1].mxu0 }
 0x11f   :  { %150 = vst [vmem:[#allocation7 + $0x8] sm:$0xff] %v141_v32  ;;  %149 = vst [vmem:[#allocation7] sm:$0xff] %v136_v34 }
 0x120   :  { %v145_v36 = vpop.f32.mrb[2].mxu1 }
 0x121   :  { %v146_v37 = vadd.f32 %v170_v29, %v145_v36  ;;  %v230_v38 = vpop.f32.mrb[3].mxu1 }
 0x123   :  { %151 = vst [vmem:[#allocation7 + $0x10] sm:$0xff] %v146_v37 }
 0x124   :  { %334 = shalt.err (!%p331_p6)
}
 0x125   :  { %s335_s15 = scalar_lea.hbm %s433_s3, 384 }
 0x126   :  { %p336_p7 = scmp.ne.s32.totalorder %s433_s3, %s335_s15  ;;  %p339_p8 = scmp.lt.u32.totalorder %s335_s15, %s433_s3 }
 0x128   :  { %p341_p9 = pnand %p339_p8, %p336_p7 }
 0x12a   :  { %344 = shalt.err (!%p341_p9)
}
 0x12b   :  { %163 = dma.vmem_to_hbm [thread:$0]  %s158_s12, 384, %s433_s3, [#allocation4], %s352_s22, %s352_s22, %s353_s23  }
 0x12c   :  { %349 = dma.done.wait [#allocation4], 384  }
 0x12d   :  { %350 = vsyncadd [#allocation4], 4294966912 }
 0x12e   :  { %167 = vsyncpa [#allocation3], 1 }
 0x12f   :  { %168 = vsyncpa [#allocation6], 1 }
 0x130   :  { %169 = vsyncpa [#allocation4], 1 }

</bundles_post_ra>
